<compile_context>
chip_gen: v7x
topology: tpu7x:2x2x1
jax: 0.10.0
libtpu: 0.0.40
codegen_flags: <defaults>
</compile_context>

<pallas_src>
import math
from functools import partial

import jax
import jax.numpy as jnp
from jax.experimental import pallas as pl
from jax.experimental.pallas import tpu as pltpu


# --------------------------- per-generation config ---------------------------

def _tpu_generation_config():
    """vmem_limit_bytes and bf16-EUP availability per TPU generation."""
    kind = ""
    try:
        kind = jax.devices()[0].device_kind.lower()
    except Exception:
        pass
    if "v7" in kind:
        vmem_limit = 40 * 1024 * 1024      # v7x: 64 MiB physical VMEM per TC
    elif "v5" in kind or "v6" in kind:
        vmem_limit = 96 * 1024 * 1024      # v5e/v6e: 128 MiB physical VMEM
    else:
        vmem_limit = 48 * 1024 * 1024      # conservative default
    exp_bf16 = ("v6" in kind) or ("v7" in kind)   # v5e EUP has no bf16
    return vmem_limit, exp_bf16


def _pick_tile(dim, target, align):
    """Largest divisor of dim <= target, preferring multiples of `align`
    (sublane/lane granularity).  Falls back to the full extent only when no
    usable divisor exists."""
    if dim <= target:
        return dim
    best_any = None
    for t in range(target, 0, -1):
        if dim % t == 0:
            if t % align == 0:
                return t
            if best_any is None:
                best_any = t
    if best_any is not None and best_any >= align:
        return best_any
    return dim


# ------------------- grouped (stacked-weight) linear kernel ------------------
# y[g] = x @ w[g] + b[g]  with a single pipelined launch; the same activation
# x is shared by all groups, so fused qkv / kv projections never stack or
# re-materialize activations in HBM.

def _grouped_linear_kernel(x_ref, w_ref, b_ref, o_ref, acc_ref):
    # grid = (G, M//tm, N//tn, K//tk); reduction axis (K) innermost.
    @pl.when(pl.program_id(3) == 0)
    def _():
        acc_ref[...] = jnp.zeros_like(acc_ref)

    # bf16 MXU operands, f32 accumulation.
    acc_ref[...] += jnp.dot(x_ref[...].astype(jnp.bfloat16),
                            w_ref[0].astype(jnp.bfloat16),
                            preferred_element_type=jnp.float32)

    @pl.when(pl.program_id(3) == pl.num_programs(3) - 1)
    def _():
        o_ref[0] = (acc_ref[...] + b_ref[0]).astype(o_ref.dtype)


def pallas_grouped_linear(x, w_g, b_g, *, out_dtype, vmem_limit,
                          tm=512, tn=512, tk=512):
    """x: (M, K) bf16; w_g: (G, K, N) bf16; b_g: (G, 1, N) f32 -> (G, M, N)."""
    M, K = x.shape
    G, _, N = w_g.shape
    tm = _pick_tile(M, tm, 8)
    tn = _pick_tile(N, tn, 128)
    tk = _pick_tile(K, tk, 128)
    out_bytes = jnp.dtype(out_dtype).itemsize
    cost = pl.CostEstimate(
        flops=2 * G * M * N * K,
        transcendentals=0,
        bytes_accessed=(M * K * 2 + G * K * N * 2 + G * N * 4
                        + G * M * N * out_bytes))
    return pl.pallas_call(
        _grouped_linear_kernel,
        out_shape=jax.ShapeDtypeStruct((G, M, N), out_dtype),
        grid=(G, M // tm, N // tn, K // tk),
        in_specs=[
            pl.BlockSpec((tm, tk), lambda g, i, j, k: (i, k)),
            pl.BlockSpec((1, tk, tn), lambda g, i, j, k: (g, k, j)),
            pl.BlockSpec((1, 1, tn), lambda g, i, j, k: (g, 0, j)),
        ],
        out_specs=pl.BlockSpec((1, tm, tn), lambda g, i, j, k: (g, i, j)),
        scratch_shapes=[pltpu.VMEM((tm, tn), jnp.float32)],
        compiler_params=pltpu.CompilerParams(
            dimension_semantics=("parallel", "parallel", "parallel",
                                 "arbitrary"),
            vmem_limit_bytes=vmem_limit),
        cost_estimate=cost,
    )(x, w_g, b_g)


# ------------------------------ attention kernel -----------------------------

def _mha_kernel(q_ref, k_ref, v_ref, o_ref, *, num_heads, head_dim, exp_bf16):
    # q_ref: (1,1,tq,E); k_ref/v_ref: (1,1,Sk,E); o_ref: (1,tq,E).
    # The 1/sqrt(D) softmax scale is pre-folded into the q projection.
    H, D = num_heads, head_dim
    tq = q_ref.shape[2]
    sk = k_ref.shape[2]
    # All heads in one batched (grouped) MXU contraction over (H, S, D) views
    # (no per-head Python loop, no per-head concatenate).
    qh = jnp.transpose(q_ref[...].reshape(tq, H, D), (1, 0, 2))   # (H,tq,D) bf16
    kh = jnp.transpose(k_ref[...].reshape(sk, H, D), (1, 0, 2))   # (H,sk,D) bf16
    vh = jnp.transpose(v_ref[...].reshape(sk, H, D), (1, 0, 2))   # (H,sk,D) bf16

    s = jnp.einsum('hqd,hkd->hqk', qh, kh,
                   preferred_element_type=jnp.float32)            # (H,tq,sk) f32
    m = jnp.max(s, axis=-1, keepdims=True)                        # f32 row max
    z = s - m
    if exp_bf16:
        z = z.astype(jnp.bfloat16)        # bf16 EUP exp (v6e/v7x only)
    p = jnp.exp(z)
    l = jnp.sum(p, axis=-1, keepdims=True, dtype=jnp.float32)     # f32 row sum
    ctx = jnp.einsum('hqk,hkd->hqd', p.astype(jnp.bfloat16), vh,
                     preferred_element_type=jnp.float32)          # (H,tq,D) f32
    ctx = ctx * pl.reciprocal(l, approx=True)
    # Single lane-dense (tq, E) store.
    out = jnp.transpose(ctx, (1, 0, 2)).reshape(1, tq, H * D)
    o_ref[...] = out.astype(o_ref.dtype)


def pallas_mha(q_arr, k_arr, v_arr, qg, kg, vg, num_heads, *,
               exp_bf16, vmem_limit):
    """Attention over packed projections.

    q_arr: (Gq, B, Sq, E) bf16; k_arr/v_arr: (Gk, B, Sk, E) bf16 (may be the
    same array as q_arr).  qg/kg/vg select the leading group index (which
    projection lives where) -- no slices are materialized in HBM.
    """
    _, B, Sq, E = q_arr.shape
    Sk = k_arr.shape[2]
    D = E // num_heads
    tq = _pick_tile(Sq, 128, 8)
    # TODO(synk): add a KV grid axis with online-softmax accumulation for long
    # key sequences (threshold ~1k on v7x / ~2k on v5e-v6e).
    cost = pl.CostEstimate(
        flops=4 * B * num_heads * Sq * Sk * D,
        transcendentals=B * num_heads * Sq * Sk,
        bytes_accessed=2 * (2 * B * Sq * E + 2 * B * Sk * E))
    return pl.pallas_call(
        partial(_mha_kernel, num_heads=num_heads, head_dim=D,
                exp_bf16=exp_bf16),
        out_shape=jax.ShapeDtypeStruct((B, Sq, E), jnp.bfloat16),
        grid=(B, Sq // tq),
        in_specs=[
            pl.BlockSpec((1, 1, tq, E), lambda b, qi, g=qg: (g, b, qi, 0)),
            pl.BlockSpec((1, 1, Sk, E), lambda b, qi, g=kg: (g, b, 0, 0)),
            pl.BlockSpec((1, 1, Sk, E), lambda b, qi, g=vg: (g, b, 0, 0)),
        ],
        out_specs=pl.BlockSpec((1, tq, E), lambda b, qi: (b, qi, 0)),
        compiler_params=pltpu.CompilerParams(
            dimension_semantics=("parallel", "parallel"),
            vmem_limit_bytes=vmem_limit),
        cost_estimate=cost,
    )(q_arr, k_arr, v_arr)


# ------------------------------ parameter prep -------------------------------

def init_params(key, embed_dim, num_heads):
    """Torch-layout parameters (as in FlashMHA._reset_parameters)."""
    k1, k2 = jax.random.split(key, 2)
    E = embed_dim
    lim_in = math.sqrt(6.0 / (E + 3 * E))          # xavier_uniform_ on (3E, E)
    in_proj_weight = jax.random.uniform(k1, (3 * E, E), jnp.float32,
                                        minval=-lim_in, maxval=lim_in)
    in_proj_bias = jnp.zeros((3 * E,), jnp.float32)
    lim_out = 1.0 / math.sqrt(E)                   # nn.Linear default
    out_proj_weight = jax.random.uniform(k2, (E, E), jnp.float32,
                                         minval=-lim_out, maxval=lim_out)
    out_proj_bias = jnp.zeros((E,), jnp.float32)
    return {
        "num_heads": num_heads,
        "in_proj_weight": in_proj_weight,
        "in_proj_bias": in_proj_bias,
        "out_proj_weight": out_proj_weight,
        "out_proj_bias": out_proj_bias,
    }


def prepare_params(params):
    """One-time weight preprocessing (hoisted out of the forward):
    transposes, q-scale folding, group stacking, bf16 casts."""
    E = params["in_proj_weight"].shape[1]
    H = params["num_heads"]
    D = E // H
    scale = 1.0 / math.sqrt(D)

    w_in = params["in_proj_weight"]        # (3E, E); torch: y = x @ W^T + b
    b_in = params["in_proj_bias"]
    w_q, w_k, w_v = w_in[:E], w_in[E:2 * E], w_in[2 * E:]
    b_q, b_k, b_v = b_in[:E], b_in[E:2 * E], b_in[2 * E:]

    w_qT = (w_q * scale).T.astype(jnp.bfloat16)    # softmax scale folded in
    w_kT = w_k.T.astype(jnp.bfloat16)
    w_vT = w_v.T.astype(jnp.bfloat16)
    b_qs = (b_q * scale).astype(jnp.float32)
    b_kf = b_k.astype(jnp.float32)
    b_vf = b_v.astype(jnp.float32)

    vmem_limit, exp_bf16 = _tpu_generation_config()
    return {
        "num_heads": H,
        "vmem_limit": vmem_limit,
        "exp_bf16": exp_bf16,
        # fused 3-way projection (self-attention)
        "w_qkv": jnp.stack([w_qT, w_kT, w_vT]),                    # (3,E,E) bf16
        "b_qkv": jnp.stack([b_qs, b_kf, b_vf]).reshape(3, 1, E),   # (3,1,E) f32
        # fused 2-way kv projection (shared key/value memory)
        "w_kv": jnp.stack([w_kT, w_vT]),                           # (2,E,E)
        "b_kv": jnp.stack([b_kf, b_vf]).reshape(2, 1, E),
        # individual projections (fully distinct q/k/v)
        "w_q": w_qT[None], "b_q": b_qs.reshape(1, 1, E),
        "w_k": w_kT[None], "b_k": b_kf.reshape(1, 1, E),
        "w_v": w_vT[None], "b_v": b_vf.reshape(1, 1, E),
        # output projection
        "w_out": params["out_proj_weight"].T.astype(jnp.bfloat16)[None],
        "b_out": params["out_proj_bias"].reshape(1, 1, E).astype(jnp.float32),
    }


# ------------------------------ FlashMHA forward -----------------------------

def flash_mha_forward(prepared, q, k=None, v=None):
    """FlashMHA.forward equivalent.

    q: (B, Sq, E) float32.
    k=None, v=None  -> self-attention (fused 3-way in-projection).
    k given, v=None -> cross-attention with shared key/value memory k
                       (fused 2-way kv in-projection).
    k, v given      -> fully distinct q/k/v (three projections, no stacking).
    Selection is by argument structure (jit-safe), with an eager-mode identity
    fallback for callers that pass the same array explicitly.
    """
    B, Sq, E = q.shape
    H = prepared["num_heads"]
    vmem_limit = prepared["vmem_limit"]
    exp_bf16 = prepared["exp_bf16"]

    self_attn = (k is None) or (k is q and (v is None or v is q))
    shared_kv = (not self_attn) and (v is None or v is k)

    q_bf = q.astype(jnp.bfloat16).reshape(B * Sq, E)

    if self_attn:
        # One (M,E) x (3,E,E) launch; output (3,M,E) bf16 feeds attention
        # directly (leading-index selection, no slices materialized).
        qkv = pallas_grouped_linear(q_bf, prepared["w_qkv"], prepared["b_qkv"],
                                    out_dtype=jnp.bfloat16,
                                    vmem_limit=vmem_limit)
        packed = qkv.reshape(3, B, Sq, E)
        ctx = pallas_mha(packed, packed, packed, 0, 1, 2, H,
                         exp_bf16=exp_bf16, vmem_limit=vmem_limit)
    elif shared_kv:
        Sk = k.shape[1]
        k_bf = k.astype(jnp.bfloat16).reshape(B * Sk, E)
        qp = pallas_grouped_linear(q_bf, prepared["w_q"], prepared["b_q"],
                                   out_dtype=jnp.bfloat16,
                                   vmem_limit=vmem_limit)           # (1,M,E)
        kvp = pallas_grouped_linear(k_bf, prepared["w_kv"], prepared["b_kv"],
                                    out_dtype=jnp.bfloat16,
                                    vmem_limit=vmem_limit)          # (2,Mk,E)
        ctx = pallas_mha(qp.reshape(1, B, Sq, E),
                         kvp.reshape(2, B, Sk, E),
                         kvp.reshape(2, B, Sk, E),
                         0, 0, 1, H, exp_bf16=exp_bf16, vmem_limit=vmem_limit)
    else:
        Sk = k.shape[1]
        k_bf = k.astype(jnp.bfloat16).reshape(B * Sk, E)
        v_bf = v.astype(jnp.bfloat16).reshape(B * Sk, E)
        qp = pallas_grouped_linear(q_bf, prepared["w_q"], prepared["b_q"],
                                   out_dtype=jnp.bfloat16,
                                   vmem_limit=vmem_limit)
        kp = pallas_grouped_linear(k_bf, prepared["w_k"], prepared["b_k"],
                                   out_dtype=jnp.bfloat16,
                                   vmem_limit=vmem_limit)
        vp = pallas_grouped_linear(v_bf, prepared["w_v"], prepared["b_v"],
                                   out_dtype=jnp.bfloat16,
                                   vmem_limit=vmem_limit)
        ctx = pallas_mha(qp.reshape(1, B, Sq, E),
                         kp.reshape(1, B, Sk, E),
                         vp.reshape(1, B, Sk, E),
                         0, 0, 0, H, exp_bf16=exp_bf16, vmem_limit=vmem_limit)

    # Out projection: bf16 context in, f32 out (mirrors the torch float cast).
    out = pallas_grouped_linear(ctx.reshape(B * Sq, E),
                                prepared["w_out"], prepared["b_out"],
                                out_dtype=jnp.float32,
                                vmem_limit=vmem_limit)              # (1,M,E)
    return out.reshape(B, Sq, E), None


# ----------------------------- reference (pure JAX) --------------------------

def flash_mha_reference(params, q, k, v):
    B, S, E = q.shape
    H = params["num_heads"]
    D = E // H
    w_in, b_in = params["in_proj_weight"], params["in_proj_bias"]
    w_q, w_k, w_v = w_in[:E], w_in[E:2 * E], w_in[2 * E:]
    b_q, b_k, b_v = b_in[:E], b_in[E:2 * E], b_in[2 * E:]
    qf = q @ w_q.T + b_q
    kf = k @ w_k.T + b_k
    vf = v @ w_v.T + b_v
    qh = qf.reshape(B, S, H, D).transpose(0, 2, 1, 3)
    kh = kf.reshape(B, -1, H, D).transpose(0, 2, 1, 3)
    vh = vf.reshape(B, -1, H, D).transpose(0, 2, 1, 3)
    s = jnp.einsum("bhqd,bhkd->bhqk", qh, kh) / math.sqrt(D)
    p = jax.nn.softmax(s, axis=-1)
    ctx = jnp.einsum("bhqk,bhkd->bhqd", p, vh)
    ctx = ctx.transpose(0, 2, 1, 3).reshape(B, S, E)
    return ctx @ params["out_proj_weight"].T + params["out_proj_bias"]


# ------------------------------------ main ------------------------------------

if __name__ == "__main__":
    B, S, E, H = 2, 8, 32, 4   # head_dim = 8 (divisible by 8, <= 128)

    key = jax.random.PRNGKey(0)
    kp, kq, kk, kv = jax.random.split(key, 4)

    params = init_params(kp, E, H)
    prepared = prepare_params(params)
    q = jax.random.normal(kq, (B, S, E), jnp.float32)
    k = jax.random.normal(kk, (B, S, E), jnp.float32)
    v = jax.random.normal(kv, (B, S, E), jnp.float32)

    # bf16 end-to-end internals (mirrors torch fp16 flash path) -> loose tol.
    TOL = dict(atol=5e-2, rtol=5e-2)

    # ---- fully distinct q/k/v (three projection launches, no stacking) ----
    out, attn_w = flash_mha_forward(prepared, q, k, v)
    out = jax.block_until_ready(out)
    ref = flash_mha_reference(params, q, k, v)
    assert out.shape == (B, S, E)
    assert attn_w is None
    assert jnp.allclose(out, ref, **TOL), "distinct q/k/v mismatch"

    # ---- shared key/value memory (fused 2-way kv projection) ----
    out_kv, _ = flash_mha_forward(prepared, q, k)
    out_kv = jax.block_until_ready(out_kv)
    ref_kv = flash_mha_reference(params, q, k, k)
    assert jnp.allclose(out_kv, ref_kv, **TOL), "shared-kv mismatch"

    # ---- self-attention (fused 3-way projection, packed attention reads) ----
    out_sa, _ = flash_mha_forward(prepared, q)
    out_sa = jax.block_until_ready(out_sa)
    ref_sa = flash_mha_reference(params, q, q, q)
    assert jnp.allclose(out_sa, ref_sa, **TOL), "self-attn mismatch"

    print("KERNEL_OK")
</pallas_src>

<mosaic_0001>
module attributes {stable_mosaic.version = 11 : i64} {
  func.func @_grouped_linear_kernel(%arg0: i32, %arg1: i32, %arg2: i32, %arg3: i32, %arg4: memref<16x32xbf16, #tpu.memory_space<vmem>>, %arg5: memref<1x32x32xbf16, #tpu.memory_space<vmem>>, %arg6: memref<1x1x32xf32, #tpu.memory_space<vmem>>, %arg7: memref<1x16x32xbf16, #tpu.memory_space<vmem>>, %arg8: memref<16x32xf32, #tpu.memory_space<vmem>>) attributes {dimension_semantics = [#tpu.dimension_semantics<parallel>, #tpu.dimension_semantics<parallel>, #tpu.dimension_semantics<parallel>, #tpu.dimension_semantics<arbitrary>], iteration_bounds = array<i64: 1, 1, 1, 1>, scalar_prefetch = 0 : i64, scratch_operands = 1 : i64, tpu.core_type = #tpu.core_type<tc>, window_params = [{transform_indices = @transform_0, window_bounds = array<i64: 16, 32>}, {transform_indices = @transform_1, window_bounds = array<i64: 1, 32, 32>}, {transform_indices = @transform_2, window_bounds = array<i64: 1, 1, 32>}, {transform_indices = @transform_3, window_bounds = array<i64: 1, 16, 32>}]} {
    %c0_i32 = arith.constant 0 : i32
    %0 = arith.cmpi eq, %arg3, %c0_i32 : i32
    %1 = arith.extui %0 : i1 to i32
    %c0_i32_0 = arith.constant 0 : i32
    %2 = arith.cmpi ne, %1, %c0_i32_0 : i32
    scf.if %2 {
      %cst_11 = arith.constant 0.000000e+00 : f32
      %13 = vector.broadcast %cst_11 : f32 to vector<16x32xf32>
      %c0_12 = arith.constant 0 : index
      %c0_13 = arith.constant 0 : index
      %14 = vector.load %arg8[%c0_12, %c0_13] : memref<16x32xf32, #tpu.memory_space<vmem>>, vector<16x32xf32>
      tpu.vector_store %arg8[%c0_12, %c0_13], %13 {strides = array<i32>} : memref<16x32xf32, #tpu.memory_space<vmem>>, vector<16x32xf32>,
    } else {
    }
    %c0 = arith.constant 0 : index
    %c0_1 = arith.constant 0 : index
    %3 = vector.load %arg8[%c0, %c0_1] : memref<16x32xf32, #tpu.memory_space<vmem>>, vector<16x32xf32>
    %c0_2 = arith.constant 0 : index
    %c0_3 = arith.constant 0 : index
    %4 = vector.load %arg4[%c0_2, %c0_3] : memref<16x32xbf16, #tpu.memory_space<vmem>>, vector<16x32xbf16>
    %c0_4 = arith.constant 0 : index
    %c0_5 = arith.constant 0 : index
    %c0_6 = arith.constant 0 : index
    %5 = vector.load %arg5[%c0_4, %c0_5, %c0_6] : memref<1x32x32xbf16, #tpu.memory_space<vmem>>, vector<1x32x32xbf16>
    %6 = vector.shape_cast %5 : vector<1x32x32xbf16> to vector<32x32xbf16>
    %cst = arith.constant dense<0.000000e+00> : vector<16x32xf32>
    %7 = tpu.matmul %4, %6, %cst {dimension_numbers = #tpu.dot_dimension_numbers<[1], [0], [0], [1], [0, 0, 1, 1], [], []>} : vector<16x32xbf16>, vector<32x32xbf16>, vector<16x32xf32> -> vector<16x32xf32>
    %8 = arith.addf %3, %7 : vector<16x32xf32>
    %c0_7 = arith.constant 0 : index
    %c0_8 = arith.constant 0 : index
    %9 = vector.load %arg8[%c0_7, %c0_8] : memref<16x32xf32, #tpu.memory_space<vmem>>, vector<16x32xf32>
    tpu.vector_store %arg8[%c0_7, %c0_8], %8 {strides = array<i32>} : memref<16x32xf32, #tpu.memory_space<vmem>>, vector<16x32xf32>,
    %c0_i32_9 = arith.constant 0 : i32
    %10 = arith.cmpi eq, %arg3, %c0_i32_9 : i32
    %11 = arith.extui %10 : i1 to i32
    %c0_i32_10 = arith.constant 0 : i32
    %12 = arith.cmpi ne, %11, %c0_i32_10 : i32
    scf.if %12 {
      %c0_11 = arith.constant 0 : index
      %c0_12 = arith.constant 0 : index
      %13 = vector.load %arg8[%c0_11, %c0_12] : memref<16x32xf32, #tpu.memory_space<vmem>>, vector<16x32xf32>
      %c0_13 = arith.constant 0 : index
      %c0_14 = arith.constant 0 : index
      %c0_15 = arith.constant 0 : index
      %14 = vector.load %arg6[%c0_13, %c0_14, %c0_15] : memref<1x1x32xf32, #tpu.memory_space<vmem>>, vector<1x1x32xf32>
      %15 = vector.shape_cast %14 : vector<1x1x32xf32> to vector<1x32xf32>
      %16 = vector.broadcast %15 : vector<1x32xf32> to vector<16x32xf32>
      %17 = arith.addf %13, %16 : vector<16x32xf32>
      %18 = arith.truncf %17 : vector<16x32xf32> to vector<16x32xbf16>
      %c0_16 = arith.constant 0 : index
      %c0_17 = arith.constant 0 : index
      %c0_18 = arith.constant 0 : index
      %19 = vector.load %arg7[%c0_16, %c0_17, %c0_18] : memref<1x16x32xbf16, #tpu.memory_space<vmem>>, vector<1x16x32xbf16>
      %20 = vector.shape_cast %19 : vector<1x16x32xbf16> to vector<16x32xbf16>
      %21 = vector.shape_cast %18 : vector<16x32xbf16> to vector<1x16x32xbf16>
      tpu.vector_store %arg7[%c0_16, %c0_17, %c0_18], %21 {strides = array<i32>} : memref<1x16x32xbf16, #tpu.memory_space<vmem>>, vector<1x16x32xbf16>,
    } else {
    }
    return
  }
  func.func @transform_0(%arg0: i32, %arg1: i32, %arg2: i32, %arg3: i32) -> (i32, i32) {
    %c0_i32 = arith.constant 0 : i32
    return %arg1, %arg3 : i32, i32
  }
  func.func @transform_1(%arg0: i32, %arg1: i32, %arg2: i32, %arg3: i32) -> (i32, i32, i32) {
    %c0_i32 = arith.constant 0 : i32
    return %arg0, %arg3, %arg2 : i32, i32, i32
  }
  func.func @transform_2(%arg0: i32, %arg1: i32, %arg2: i32, %arg3: i32) -> (i32, i32, i32) {
    %c0_i32 = arith.constant 0 : i32
    %c0_i32_0 = arith.constant 0 : i32
    return %arg0, %c0_i32, %arg2 : i32, i32, i32
  }
  func.func @transform_3(%arg0: i32, %arg1: i32, %arg2: i32, %arg3: i32) -> (i32, i32, i32) {
    %c0_i32 = arith.constant 0 : i32
    return %arg0, %arg1, %arg2 : i32, i32, i32
  }
}

</mosaic_0001>

<bundles_post_ra>
// kernel: tpu_custom_call.1
= control target key start
LH: loop header
LB: loop body
LE: loop exit
PB: predicated region body
PF: predicated region fallthrough
CT: control target
= control target key end

     0   :  { %8 = vsyncpa [#allocation4], 0  ;;  %s350_s0 = inlined_call_operand.hbm [shape: bf16[16,32], index: 0, kind: input, shape index: {}]   ;;  %s351_s1 = inlined_call_operand.hbm [shape: bf16[1,32,32], index: 1, kind: input, shape index: {}]   ;;  %s352_s2 = inlined_call_operand.vmem [shape: f32[1,1,32], index: 2, kind: input, shape index: {}]   ;;  %s353_s3 = inlined_call_operand.hbm [shape: bf16[1,16,32], index: 3, kind: output, shape index: {}]  }
   0x1   :  { %9 = vsyncpa [#allocation7], 0 }
   0x2   :  { %10 = vsyncpa [#allocation5], 0  ;;  %s270_s12 = smov [#allocation3]   ;;  %s198_s16 = scalar_lea.hbm %s350_s0, 128 }
   0x3   :  { %s16_s13 = sshll.u32 %s270_s12, 4  ;;  %p199_p0 = scmp.ne.s32.totalorder %s350_s0, %s198_s16  ;;  %s17_s13 = int_to_ptr.vmem [resolvable:$true] %s16_s13 }
   0x4   :  { %p202_p1 = scmp.lt.u32.totalorder %s198_s16, %s350_s0 }
   0x6   :  { %p204_p2 = pnand %p202_p1, %p199_p0 }
   0x8   :  { %207 = shalt.err (!%p204_p2)
}
   0x9   :  { %s208_s21 = scalar_lea.vmem %s17_s13, 128  ;;  %p213_p4 = scmp.lt.s32.totalorder %s17_s13, %s17_s13 }
   0xa   :  { %p209_p3 = scmp.ne.s32.totalorder %s17_s13, %s208_s21  ;;  %p214_p5 = scmp.lt.s32.totalorder %s208_s21, %s208_s21 }
   0xc   :  { %p215_p6 = por %p214_p5, %p213_p4 }
   0xe   :  { %p216_p7 = pnand %p215_p6, %p209_p3 }
  0x10   :  { %219 = shalt.err (!%p216_p7)
}
  0x11   :  { %s271_s22 = smov 64   ;;  %s272_s23 = smov 4  }
  0x12   :  { %22 = dma.hbm_to_vmem [thread:$0]  %s350_s0, 128, %s17_s13, [#allocation4], %s271_s22, %s271_s22, %s272_s23  }
  0x13   :  { %s273_s26 = smov [#allocation6]   ;;  %s220_s30 = scalar_lea.hbm %s351_s1, 256 }
  0x14   :  { %s28_s27 = sshll.u32 %s273_s26, 4  ;;  %p221_p8 = scmp.ne.s32.totalorder %s351_s1, %s220_s30  ;;  %s29_s27 = int_to_ptr.vmem [resolvable:$true] %s28_s27 }
  0x15   :  { %p224_p9 = scmp.lt.u32.totalorder %s220_s30, %s351_s1 }
  0x17   :  { %p226_p10 = pnand %p224_p9, %p221_p8 }
  0x19   :  { %229 = shalt.err (!%p226_p10)
}
  0x1a   :  { %s230_s8 = scalar_lea.vmem %s29_s27, 256  ;;  %p235_p12 = scmp.lt.s32.totalorder %s29_s27, %s29_s27 }
  0x1b   :  { %p231_p11 = scmp.ne.s32.totalorder %s29_s27, %s230_s8  ;;  %p236_p13 = scmp.lt.s32.totalorder %s230_s8, %s230_s8 }
  0x1d   :  { %p237_p0 = por %p236_p13, %p235_p12 }
  0x1f   :  { %p238_p1 = pnand %p237_p0, %p231_p11 }
  0x21   :  { %241 = shalt.err (!%p238_p1)
}
  0x22   :  { %34 = dma.hbm_to_vmem [thread:$0]  %s351_s1, 256, %s29_s27, [#allocation7], %s271_s22, %s271_s22, %s272_s23  }
  0x23   :  { %264 = dma.done.wait [#allocation4], 128  }
  0x24   :  { %265 = vsyncadd [#allocation4], 4294967168 }
  0x25   :  { %266 = dma.done.wait [#allocation7], 256  }
  0x26   :  { %267 = vsyncadd [#allocation7], 4294967040  ;;  %vm48_vm0 = vcmask 261120   ;;  %v274_v0 = vmov 0.0   ;;  %vm275_vm1 = vmmov 0   ;;  %v195_v1 = vld [vmem:[#allocation6] sm:$0xff]  }
  0x27   :  { %180 = vmatprep.subr.bf16.mxu0 %v274_v0  ;;  %184 = vmatprep.mubr.msk.bf16.mxu0 %vm275_vm1, %v274_v0  ;;  %49 = vst.msk [vmem:[#allocation2] sm:$0xff] %vm48_vm0, %v274_v0  ;;  %50 = vst.msk [vmem:[#allocation2 + $0x8] sm:$0xff] %vm48_vm0, %v274_v0  ;;  %v196_v2 = vld [vmem:[#allocation6 + $0x8] sm:$0xff]   ;;  %v197_v3 = vld [vmem:[#allocation3] sm:$0xff]   ;;  %vm147_vm2 = vcmask 257024   ;;  %s276_s11 = smov [#allocation8]  }
  0x28   :  { %181 = vmatpush3.bf16.msra.mxu0 %v195_v1  ;;  %v172_v12 = vld [vmem:[%s352_s2] ss:$0 sm:$0xff]  ;;  %s155_s12 = sshll.u32 %s276_s11, 4  ;;  %s156_s12 = int_to_ptr.vmem [resolvable:$true] %s155_s12 }
  0x29   :  { %182 = vmatprep.subr.bf16.mxu0 %v274_v0  ;;  %s242_s13 = scalar_lea.vmem %s156_s12, 128  ;;  %p247_p3 = scmp.lt.s32.totalorder %s156_s12, %s156_s12 }
  0x2a   :  { %p243_p2 = scmp.ne.s32.totalorder %s156_s12, %s242_s13  ;;  %p248_p4 = scmp.lt.s32.totalorder %s242_s13, %s242_s13 }
  0x2c   :  { %183 = vmatpush3.bf16.msra.mxu0 %v196_v2  ;;  %p249_p5 = por %p248_p4, %p247_p3 }
  0x2e   :  { %v51_v4 = vld [vmem:[#allocation2] sm:$0xff]  ;;  %v52_v6 = vld [vmem:[#allocation2 + $0x8] sm:$0xff]  ;;  %p250_p6 = pnand %p249_p5, %p243_p2 }
  0x2f   :  { %185 = vmatmul.mubr.msk.bf16.vlgmr.msra.gmra.mrb[0].mxu0 %vm48_vm0, %v197_v3 }
 0x102   :  { %v114_v5 = vpop.f32.mrb[0].mxu0 }
 0x103   :  { %v121_v7 = vadd.f32 %v114_v5, %v51_v4  ;;  %v186_v8 = vpop.f32.mrb[1].mxu0 }
 0x104   :  { %v117_v9 = vpop.f32.mrb[2].mxu0 }
 0x105   :  { %123 = vst.msk [vmem:[#allocation2] sm:$0xff] %vm48_vm0, %v121_v7  ;;  %v122_v10 = vadd.f32 %v117_v9, %v52_v6  ;;  %v187_v11 = vpop.f32.mrb[3].mxu0 }
 0x107   :  { %124 = vst.msk [vmem:[#allocation2 + $0x8] sm:$0xff] %vm48_vm0, %v122_v10 }
 0x10c   :  { %v128_v13 = vld [vmem:[#allocation2] sm:$0xff] }
 0x10d   :  { %v137_v14 = vadd.f32 %v172_v12, %v128_v13 }
 0x10e   :  { %v129_v15 = vld [vmem:[#allocation2 + $0x8] sm:$0xff] }
 0x10f   :  { %v138_v16 = vadd.f32 %v172_v12, %v129_v15  ;;  %v175_v17 = vpack.c.bf16 %v137_v14, %v137_v14 }
 0x111   :  { %v176_v18 = vpack.c.bf16 %v138_v16, %v138_v16  ;;  %148 = vst.msk [vmem:[#allocation8] sm:$0xf] %vm147_vm2, %v175_v17 }
 0x113   :  { %149 = vst.msk [vmem:[#allocation8 + $0x4] sm:$0xf] %vm147_vm2, %v176_v18 }
 0x114   :  { %253 = shalt.err (!%p250_p6)
}
 0x115   :  { %s254_s15 = scalar_lea.hbm %s353_s3, 128 }
 0x116   :  { %p255_p7 = scmp.ne.s32.totalorder %s353_s3, %s254_s15  ;;  %p258_p8 = scmp.lt.u32.totalorder %s254_s15, %s353_s3 }
 0x118   :  { %p260_p9 = pnand %p258_p8, %p255_p7 }
 0x11a   :  { %263 = shalt.err (!%p260_p9)
}
 0x11b   :  { %161 = dma.vmem_to_hbm [thread:$0]  %s156_s12, 128, %s353_s3, [#allocation5], %s271_s22, %s271_s22, %s272_s23  }
 0x11c   :  { %268 = dma.done.wait [#allocation5], 128  }
 0x11d   :  { %269 = vsyncadd [#allocation5], 4294967168 }
 0x11e   :  { %165 = vsyncpa [#allocation4], 1 }
 0x11f   :  { %166 = vsyncpa [#allocation7], 1 }
 0x120   :  { %167 = vsyncpa [#allocation5], 1 }

</bundles_post_ra>
